<compile_context>
chip_gen: v7x
topology: tpu7x:2x2x1
jax: 0.10.0
libtpu: 0.0.40
codegen_flags: <defaults>
</compile_context>

<pallas_src>
import jax
import jax.numpy as jnp
from jax.experimental import pallas as pl
from jax.experimental.pallas import tpu as pltpu


def _normalization_kernel(x_ref, p_ref, o_ref):
    # x_ref: (TR, TL) tile of the input slab (x's dtype).
    # p_ref: (TR, 2) float32 per-row params: col 0 = -mean, col 1 = 1/std.
    x = x_ref[...]
    mneg = p_ref[:, 0:1]  # (TR, 1) -> broadcasts across lanes, promotes to f32
    srec = p_ref[:, 1:2]  # (TR, 1)
    o_ref[...] = ((x + mneg) * srec).astype(o_ref.dtype)


def _round_up(x, m):
    return ((x + m - 1) // m) * m


def _round_down(x, m):
    return (x // m) * m


def _row_granularity(itemsize):
    # vreg sublane packing: 8 for 4-byte, 16 for 2-byte, 32 for 1-byte dtypes.
    return max(8, 32 // int(itemsize))


def _choose_tiles(rows, lanes, itemsize, target_bytes):
    """Pick (TR, TL): TR % gran == 0, TL % 128 == 0, TR*TL*itemsize ~ target."""
    gran = _row_granularity(itemsize)
    target_elems = max(target_bytes // itemsize, gran * 128)
    lanes_p = _round_up(lanes, 128)
    # Lane tile: lane-dense, large enough that even TR=gran reaches the
    # target, but never wider than the (128-rounded) lane extent.
    tl_cap = max(128, _round_down(target_elems // gran, 128))
    tl = min(lanes_p, tl_cap)
    # Row tile: fill the remaining budget, multiple of gran, no larger than needed.
    tr = max(gran, _round_down(target_elems // tl, gran))
    tr = min(tr, _round_up(rows, gran))
    # v7x megacore: if the lane axis collapses to one tile and the row axis
    # would too, split the rows so both TensorCores get a parallel tile.
    if tl >= lanes_p and tr >= rows and rows >= 2 * gran:
        tr = _round_up(pl.cdiv(rows, 2), gran)
    return tr, tl


def normalization(x, mean, std, *, target_block_bytes=4 * 1024 * 1024):
    """(x + (-mean)) * (1/std) with per-channel mean/std.  x is NCHW."""
    n, c, h, w = x.shape

    # Match the PyTorch module: float32 buffers mean_negative / std_reciprocal.
    mean_f32 = jnp.broadcast_to(jnp.asarray(mean, jnp.float32).ravel(), (c,))
    std_f32 = jnp.broadcast_to(jnp.asarray(std, jnp.float32).ravel(), (c,))
    mean_negative = -mean_f32
    std_reciprocal = 1.0 / std_f32

    rows = n * c
    lanes = h * w

    # Tiny-spatial regime (e.g. 7x7 / small maps): a Pallas path would waste
    # most of the 128-lane width on masked stores, and a relayout to
    # (C, N*H*W) costs its own HBM round-trip; let XLA fuse the elementwise op.
    if lanes < 128 or rows * lanes < 8 * 128:
        # TODO(synk): per-channel lane relayout Pallas path for tiny feature
        # maps if this regime ever shows up on a profile.
        out = (x + mean_negative.reshape(1, c, 1, 1)) * std_reciprocal.reshape(1, c, 1, 1)
        return out.astype(x.dtype)

    x2 = x.reshape(rows, lanes)

    # Pack both per-row scalars into one (rows, 2) float32 array -> one small
    # DMA per row-tile, full precision on the scale/offset; only the final
    # store casts back to x.dtype.
    params = jnp.stack(
        [jnp.tile(mean_negative, (n,)), jnp.tile(std_reciprocal, (n,))], axis=-1
    )  # (rows, 2) float32

    itemsize = jnp.dtype(x.dtype).itemsize
    tr, tl = _choose_tiles(rows, lanes, itemsize, target_block_bytes)

    # Lane-tile axis innermost so the (TR, 2) param block (index_map
    # independent of j) is fetched once per row-tile.  Ragged edges (rows not
    # a multiple of tr, lanes not a multiple of tl / 128) are handled by the
    # pl.cdiv grid + Pallas edge masking: no wrapper pad, no output slice.
    grid = (pl.cdiv(rows, tr), pl.cdiv(lanes, tl))

    # VMEM budget: double-buffered in + out blocks, double-buffered params,
    # plus slack.  Stays well under 64 MiB (v7x per-TC) / 128 MiB (v5e/v6e).
    block_bytes = tr * tl * itemsize
    vmem_limit = int(4 * block_bytes + 4 * tr * 2 * 4 + (2 << 20))
    vmem_limit = max(16 << 20, min(vmem_limit, 48 << 20))

    cost = pl.CostEstimate(
        flops=2 * rows * lanes,
        transcendentals=0,
        bytes_accessed=2 * rows * lanes * itemsize + rows * 2 * 4,
    )

    out2 = pl.pallas_call(
        _normalization_kernel,
        out_shape=jax.ShapeDtypeStruct((rows, lanes), x.dtype),
        grid_spec=pltpu.PrefetchScalarGridSpec(
            num_scalar_prefetch=0,
            grid=grid,
            in_specs=[
                pl.BlockSpec((tr, tl), lambda i, j: (i, j)),
                pl.BlockSpec((tr, 2), lambda i, j: (i, 0)),
            ],
            out_specs=pl.BlockSpec((tr, tl), lambda i, j: (i, j)),
        ),
        compiler_params=pltpu.CompilerParams(
            dimension_semantics=("parallel", "parallel"),
            vmem_limit_bytes=vmem_limit,
        ),
        cost_estimate=cost,
    )(x2, params)

    return out2.reshape(n, c, h, w)


if __name__ == "__main__":
    key = jax.random.PRNGKey(0)
    k1, k2 = jax.random.split(key)

    # Deterministic per-channel normalization constants (module __init__ args).
    C = 4
    mean = jnp.array([0.1, 0.2, 0.3, 0.4], dtype=jnp.float32)
    std = jnp.array([0.5, 1.0, 1.5, 2.0], dtype=jnp.float32)

    def ref_fn(x):
        return (x + (-mean).reshape(1, C, 1, 1)) * (1.0 / std).reshape(1, C, 1, 1)

    # Main case: 128-aligned lane axis (H*W = 256).
    x = jax.random.normal(k1, (2, C, 16, 16), dtype=jnp.float32)
    out = jax.block_until_ready(normalization(x, mean, std))
    assert out.shape == x.shape
    assert jnp.allclose(out, ref_fn(x), atol=1e-6, rtol=1e-6)

    # Ragged case: H*W = 144 (> 128, not a multiple of 128) exercises the
    # masked edge lane-tile path (no wrapper pad / slice).
    xr = jax.random.normal(k2, (2, C, 12, 12), dtype=jnp.float32)
    outr = jax.block_until_ready(normalization(xr, mean, std))
    assert outr.shape == xr.shape
    assert jnp.allclose(outr, ref_fn(xr), atol=1e-6, rtol=1e-6)

    print("KERNEL_OK")
</pallas_src>

<mosaic_0001>
module attributes {stable_mosaic.version = 11 : i64} {
  func.func @_normalization_kernel(%arg0: i32, %arg1: i32, %arg2: memref<8x256xf32, #tpu.memory_space<vmem>>, %arg3: memref<8x2xf32, #tpu.memory_space<vmem>>, %arg4: memref<8x256xf32, #tpu.memory_space<vmem>>) attributes {dimension_semantics = [#tpu.dimension_semantics<parallel>, #tpu.dimension_semantics<parallel>], iteration_bounds = array<i64: 1, 1>, scalar_prefetch = 0 : i64, scratch_operands = 0 : i64, tpu.core_type = #tpu.core_type<tc>, window_params = [{transform_indices = @transform_0, window_bounds = array<i64: 8, 256>}, {transform_indices = @transform_1, window_bounds = array<i64: 8, 2>}, {transform_indices = @transform_2, window_bounds = array<i64: 8, 256>}]} {
    %c0 = arith.constant 0 : index
    %c0_0 = arith.constant 0 : index
    %0 = vector.load %arg2[%c0, %c0_0] : memref<8x256xf32, #tpu.memory_space<vmem>>, vector<8x256xf32>
    %c0_1 = arith.constant 0 : index
    %c0_2 = arith.constant 0 : index
    %1 = vector.load %arg3[%c0_1, %c0_2] : memref<8x2xf32, #tpu.memory_space<vmem>>, vector<8x1xf32>
    %c0_3 = arith.constant 0 : index
    %c1 = arith.constant 1 : index
    %2 = vector.load %arg3[%c0_3, %c1] : memref<8x2xf32, #tpu.memory_space<vmem>>, vector<8x1xf32>
    %3 = vector.broadcast %1 : vector<8x1xf32> to vector<8x256xf32>
    %4 = arith.addf %0, %3 : vector<8x256xf32>
    %5 = vector.broadcast %2 : vector<8x1xf32> to vector<8x256xf32>
    %6 = arith.mulf %4, %5 : vector<8x256xf32>
    %c0_4 = arith.constant 0 : index
    %c0_5 = arith.constant 0 : index
    %7 = vector.load %arg4[%c0_4, %c0_5] : memref<8x256xf32, #tpu.memory_space<vmem>>, vector<8x256xf32>
    tpu.vector_store %arg4[%c0_4, %c0_5], %6 {strides = array<i32>} : memref<8x256xf32, #tpu.memory_space<vmem>>, vector<8x256xf32>,
    return
  }
  func.func @transform_0(%arg0: i32, %arg1: i32) -> (i32, i32) {
    %c0_i32 = arith.constant 0 : i32
    return %arg0, %arg1 : i32, i32
  }
  func.func @transform_1(%arg0: i32, %arg1: i32) -> (i32, i32) {
    %c0_i32 = arith.constant 0 : i32
    %c0_i32_0 = arith.constant 0 : i32
    return %arg0, %c0_i32 : i32, i32
  }
  func.func @transform_2(%arg0: i32, %arg1: i32) -> (i32, i32) {
    %c0_i32 = arith.constant 0 : i32
    return %arg0, %arg1 : i32, i32
  }
}

</mosaic_0001>

<bundles_post_ra>
// kernel: tpu_custom_call.1
= control target key start
LH: loop header
LB: loop body
LE: loop exit
PB: predicated region body
PF: predicated region fallthrough
CT: control target
= control target key end

     0   :  { %7 = vsyncpa [#allocation3], 0  ;;  %s157_s0 = inlined_call_operand.hbm [shape: f32[8,256], index: 0, kind: input, shape index: {}]   ;;  %s158_s1 = inlined_call_operand.vmem [shape: f32[8,2], index: 1, kind: input, shape index: {}]   ;;  %s159_s2 = inlined_call_operand.hbm [shape: f32[8,256], index: 2, kind: output, shape index: {}]  }
   0x1   :  { %8 = vsyncpa [#allocation4], 0  ;;  %s111_s9 = smov [#allocation2]   ;;  %s63_s13 = scalar_lea.hbm %s157_s0, 256 }
   0x2   :  { %s15_s10 = sshll.u32 %s111_s9, 4  ;;  %p64_p0 = scmp.ne.s32.totalorder %s157_s0, %s63_s13  ;;  %s16_s10 = int_to_ptr.vmem [resolvable:$true] %s15_s10 }
   0x3   :  { %p67_p1 = scmp.lt.u32.totalorder %s63_s13, %s157_s0 }
   0x5   :  { %p69_p2 = pnand %p67_p1, %p64_p0 }
   0x7   :  { %72 = shalt.err (!%p69_p2)
}
   0x8   :  { %s73_s18 = scalar_lea.vmem %s16_s10, 256  ;;  %p78_p4 = scmp.lt.s32.totalorder %s16_s10, %s16_s10 }
   0x9   :  { %p74_p3 = scmp.ne.s32.totalorder %s16_s10, %s73_s18  ;;  %p79_p5 = scmp.lt.s32.totalorder %s73_s18, %s73_s18 }
   0xb   :  { %p80_p6 = por %p79_p5, %p78_p4 }
   0xd   :  { %p81_p7 = pnand %p80_p6, %p74_p3 }
   0xf   :  { %84 = shalt.err (!%p81_p7)
}
  0x10   :  { %18 = dma.hbm_to_vmem [thread:$0]  %s157_s0, 256, %s16_s10, [#allocation3]  }
  0x11   :  { %107 = dma.done.wait [#allocation3], 256  }
  0x12   :  { %108 = vsyncadd [#allocation3], 4294967040  ;;  %v112_v0 = vmov 0   ;;  %v26_v1 = vld [vmem:[%s158_s1] sm:$0xff]  ;;  %v113_v2 = vmov 1   ;;  %v25_v5 = vld [vmem:[#allocation2 + $0x8] sm:$0xff] }
  0x13   :  { %61 = vset.pattern.permute.xlu0 %v112_v0  ;;  %v24_v4 = vld [vmem:[#allocation2] sm:$0xff]  ;;  %s114_s23 = smov [#allocation5]  }
  0x14   :  { %29 = vperm.xlu0 %61, %v26_v1   ;;  %s48_s24 = sshll.u32 %s114_s23, 4  ;;  %s49_s24 = int_to_ptr.vmem [resolvable:$true] %s48_s24 }
  0x15   :  { %s85_s0 = scalar_lea.vmem %s49_s24, 256  ;;  %p90_p9 = scmp.lt.s32.totalorder %s49_s24, %s49_s24 }
  0x16   :  { %p86_p8 = scmp.ne.s32.totalorder %s49_s24, %s85_s0  ;;  %p91_p10 = scmp.lt.s32.totalorder %s85_s0, %s85_s0 }
  0x18   :  { %62 = vset.pattern.permute.xlu0 %v113_v2  ;;  %p92_p11 = por %p91_p10, %p90_p9 }
  0x19   :  { %35 = vperm.xlu0 %62, %v26_v1  }
  0x1a   :  { %p93_p12 = pnand %p92_p11, %p86_p8 }
  0x93   :  { %v30_v3 = vpop.permute.xlu0 %29 }
  0x94   :  { %v32_v6 = vadd.f32 %v30_v3, %v24_v4  ;;  %v33_v7 = vadd.f32 %v30_v3, %v25_v5 }
  0x98   :  { %v36_v8 = vpop.permute.xlu0 %35 }
  0x99   :  { %v38_v9 = vmul.f32 %v36_v8, %v32_v6  ;;  %v39_v10 = vmul.f32 %v36_v8, %v33_v7 }
  0x9b   :  { %40 = vst [vmem:[#allocation5] sm:$0xff] %v38_v9  ;;  %41 = vst [vmem:[#allocation5 + $0x8] sm:$0xff] %v39_v10 }
  0x9c   :  { %96 = shalt.err (!%p93_p12)
}
  0x9d   :  { %s97_s26 = scalar_lea.hbm %s159_s2, 256 }
  0x9e   :  { %p98_p13 = scmp.ne.s32.totalorder %s159_s2, %s97_s26  ;;  %p101_p0 = scmp.lt.u32.totalorder %s97_s26, %s159_s2 }
  0xa0   :  { %p103_p1 = pnand %p101_p0, %p98_p13 }
  0xa2   :  { %106 = shalt.err (!%p103_p1)
}
  0xa3   :  { %51 = dma.vmem_to_hbm [thread:$0]  %s49_s24, 256, %s159_s2, [#allocation4]  }
  0xa4   :  { %109 = dma.done.wait [#allocation4], 256  }
  0xa5   :  { %110 = vsyncadd [#allocation4], 4294967040 }
  0xa6   :  { %55 = vsyncpa [#allocation3], 1 }
  0xa7   :  { %56 = vsyncpa [#allocation4], 1 }

</bundles_post_ra>
